<compile_context>
chip_gen: v5e
topology: v5e:2x2
jax: 0.10.0
libtpu: 0.0.40
codegen_flags: <defaults>
</compile_context>

<pallas_src>
import jax
import jax.numpy as jnp
from jax.experimental import pallas as pl
from jax.experimental.pallas import tpu as pltpu

IN_PAD = 8      # sublane-friendly padded contraction dim
OUT_PAD = 128   # lane-dense padded output width


def linear_add_kernel(x_ref, wt_ref, bo_ref, out_ref):
    x = x_ref[...]        # (B, IN_PAD)        f32, zero-padded cols
    wt = wt_ref[...]      # (IN_PAD, OUT_PAD)  f32, zero-padded W^T
    bo = bo_ref[...]      # (2, OUT_PAD): row0 = bias, row1 = bias + other

    # MXU matmul; zero padding of x / wt makes the padded contraction exact.
    s = jnp.dot(x, wt, preferred_element_type=jnp.float32)   # (B, OUT_PAD)

    v1 = s + bo[0:1, :]   # (B, OUT_PAD)   -- independent adds (bias+other prefolded)
    v2 = s + bo[1:2, :]   # (B, OUT_PAD)

    # Single contiguous store of the (2*B, OUT_PAD) slab: rows [0,B) = v1,
    # rows [B, 2B) = v2.
    out_ref[...] = jnp.concatenate([v1, v2], axis=0).astype(out_ref.dtype)


def make_forward(weight, bias, other):
    """weight: (OUT, IN) f32 (PyTorch layout); bias/other: (OUT,) f32.

    Returns a jitted forward(x) -> (v1, v2).  All parameter padding /
    transposition / bias+other folding happens once, here.
    """
    OUT, IN = weight.shape

    wt_p = jnp.zeros((IN_PAD, OUT_PAD), jnp.float32).at[:IN, :OUT].set(weight.T)
    bo_p = jnp.zeros((2, OUT_PAD), jnp.float32)
    bo_p = bo_p.at[0, :OUT].set(bias).at[1, :OUT].set(bias + other)

    vmem = pl.BlockSpec(memory_space=pltpu.MemorySpace.VMEM)

    @jax.jit
    def forward(x):
        B = x.shape[0]
        # Only per-call prep: zero-pad the contraction dim of x to IN_PAD.
        x_p = jnp.zeros((B, IN_PAD), jnp.float32).at[:, :IN].set(x)

        out = pl.pallas_call(
            linear_add_kernel,
            out_shape=jax.ShapeDtypeStruct((2 * B, OUT_PAD), jnp.float32),
            in_specs=[vmem, vmem, vmem],
            out_specs=vmem,
        )(x_p, wt_p, bo_p)

        v1 = out[:B, :OUT]
        v2 = out[B:, :OUT]
        return v1, v2

    return forward


if __name__ == "__main__":
    key = jax.random.PRNGKey(0)
    k_x, k_w, k_b, k_o = jax.random.split(key, 4)

    IN = OUT = 6
    B = 1

    # Deterministic synthetic parameters (matching nn.Linear(6, 6) + rand(6)).
    x1 = jax.random.normal(k_x, (B, IN), dtype=jnp.float32)
    weight = jax.random.normal(k_w, (OUT, IN), dtype=jnp.float32) * 0.1
    bias = jax.random.normal(k_b, (OUT,), dtype=jnp.float32) * 0.1
    other = jax.random.uniform(k_o, (OUT,), dtype=jnp.float32)

    forward = make_forward(weight, bias, other)
    v1, v2 = forward(x1)
    jax.block_until_ready((v1, v2))

    # Reference check in plain JAX.
    v1_ref = x1 @ weight.T + bias
    v2_ref = v1_ref + other
    assert jnp.allclose(v1, v1_ref, atol=1e-5), "v1 mismatch"
    assert jnp.allclose(v2, v2_ref, atol=1e-5), "v2 mismatch"

    print("KERNEL_OK")
</pallas_src>

<mosaic_0001>
module attributes {stable_mosaic.version = 11 : i64} {
  func.func @linear_add_kernel(%arg0: memref<1x8xf32, #tpu.memory_space<vmem>>, %arg1: memref<8x128xf32, #tpu.memory_space<vmem>>, %arg2: memref<2x128xf32, #tpu.memory_space<vmem>>, %arg3: memref<2x128xf32, #tpu.memory_space<vmem>>) attributes {dimension_semantics = [], scalar_prefetch = 0 : i64, scratch_operands = 0 : i64, tpu.core_type = #tpu.core_type<tc>} {
    %c0 = arith.constant 0 : index
    %c0_0 = arith.constant 0 : index
    %0 = vector.load %arg0[%c0, %c0_0] : memref<1x8xf32, #tpu.memory_space<vmem>>, vector<1x8xf32>
    %c0_1 = arith.constant 0 : index
    %c0_2 = arith.constant 0 : index
    %1 = vector.load %arg1[%c0_1, %c0_2] : memref<8x128xf32, #tpu.memory_space<vmem>>, vector<8x128xf32>
    %c0_3 = arith.constant 0 : index
    %c0_4 = arith.constant 0 : index
    %2 = vector.load %arg2[%c0_3, %c0_4] : memref<2x128xf32, #tpu.memory_space<vmem>>, vector<2x128xf32>
    %cst = arith.constant dense<0.000000e+00> : vector<1x128xf32>
    %3 = tpu.matmul %0, %1, %cst {dimension_numbers = #tpu.dot_dimension_numbers<[1], [0], [0], [1], [0, 0, 1, 1], [], []>} : vector<1x8xf32>, vector<8x128xf32>, vector<1x128xf32> -> vector<1x128xf32>
    %4 = vector.extract_strided_slice %2 {offsets = [0, 0], sizes = [1, 128], strides = [1, 1]} : vector<2x128xf32> to vector<1x128xf32>
    %5 = arith.addf %3, %4 : vector<1x128xf32>
    %6 = vector.extract_strided_slice %2 {offsets = [1, 0], sizes = [1, 128], strides = [1, 1]} : vector<2x128xf32> to vector<1x128xf32>
    %7 = arith.addf %3, %6 : vector<1x128xf32>
    %8 = tpu.concatenate %5, %7 in 0 : vector<1x128xf32>, vector<1x128xf32> -> vector<2x128xf32>
    %c0_5 = arith.constant 0 : index
    %c0_6 = arith.constant 0 : index
    %9 = vector.load %arg3[%c0_5, %c0_6] : memref<2x128xf32, #tpu.memory_space<vmem>>, vector<2x128xf32>
    tpu.vector_store %arg3[%c0_5, %c0_6], %8 {strides = array<i32>} : memref<2x128xf32, #tpu.memory_space<vmem>>, vector<2x128xf32>,
    return
  }
}

</mosaic_0001>

<bundles_post_ra>
// kernel: forward.1
= control target key start
LH: loop header
LB: loop body
LE: loop exit
PB: predicated region body
PF: predicated region fallthrough
CT: control target
= control target key end

     0   :  { %8 = vsyncpa [#allocation3], 0  ;;  %s99_s15 = smov [#allocation2]   ;;  %s132_s0 = inlined_call_operand.vmem [shape: f32[1,8], index: 0, kind: input, shape index: {}]   ;;  %s133_s1 = inlined_call_operand.hbm [shape: f32[8,128], index: 1, kind: input, shape index: {}]   ;;  %s134_s2 = inlined_call_operand.vmem [shape: f32[2,128], index: 2, kind: input, shape index: {}]   ;;  %s135_s3 = inlined_call_operand.vmem [shape: f32[2,128], index: 3, kind: output, shape index: {}]  }
   0x1   :  { %s16_s14 = sshll.u32 %s133_s1, 4  ;;  %s18_s16 = sshll.u32 %s99_s15, 4  ;;  %s17_s14 = int_to_ptr.hbm [resolvable:$true] %s16_s14  ;;  %s19_s16 = int_to_ptr.vmem [resolvable:$true] %s18_s16 }
   0x2   :  { %21 = dma.hbm_to_vmem [thread:$0]  %s17_s14, 128, %s19_s16, [#allocation3]  }
   0x3   :  { %97 = dma.done.wait [#allocation3], 128  }
   0x4   :  { %98 = vsyncadd [#allocation3], 4294967168  ;;  %vm31_vm0 = vcmask 64512   ;;  %v29_v0 = vld [vmem:[#allocation2] sm:$0xff]  ;;  %vm63_vm1 = vcmask 1040384  }
   0x5   :  { %v28_v1 = vld [vmem:[%s132_s0] sm:$0x1]  ;;  %50 = vmatpush.msra.mxu0 %v29_v0 }
   0x6   :  { %71 = vmatmul.msk.f32.vlgmr.msra.gmra.mxu0 %vm31_vm0, %v28_v1  ;;  %v30_v2 = vld [vmem:[%s134_s2] sm:$0x3] }
   0x7   :  { %v57_v3 = vrot.slane %v30_v2, 1 }
  0x83   :  { %v52_v4 = vpop.f32.mrf.mxu0 }
  0x84   :  { %v59_v5 = vadd.f32 %v57_v3, %v52_v4  ;;  %v55_v6 = vadd.f32 %v52_v4, %v30_v2 }
  0x86   :  { %v61_v7 = vrot.slane %v59_v5, 7 }
  0x88   :  { %v64_v8 = vsel %vm63_vm1, %v55_v6, %v61_v7 }
  0x89   :  { %65 = vst [vmem:[%s135_s3] sm:$0x3] %v64_v8 }
  0x8a   :  { %70 = vsyncpa [#allocation3], 1 }

</bundles_post_ra>
